<compile_context>
chip_gen: v6e
topology: v6e:2x2x1
jax: 0.10.0
libtpu: 0.0.40
codegen_flags: <defaults>
</compile_context>

<pallas_src>
from math import log

import jax
import jax.numpy as jnp
from jax.experimental import pallas as pl
from jax.experimental.pallas import tpu as pltpu

SIGMA = 25.0
LOG_SIGMA = log(SIGMA)

# VMEM budgeting (bytes), conservative across v5e / v6e / v7x.
_VMEM_LIMIT_BYTES = 32 * 1024 * 1024   # explicit scoped-VMEM request
_TILE_VMEM_BUDGET = 16 * 1024 * 1024   # cap for double-buffered x + out blocks
_MIN_STEPS = 8                         # >= 4 pipelined steps per v7x TensorCore
_MAX_P = 2048                          # 512-2048 lanes ~ 85% of HBM roofline


def _choose_pixel_tile(HW, B, C, dtype_bytes):
    """Largest lane-dense P (multiple of 128 dividing HW) within the VMEM budget,
    preferring >= _MIN_STEPS grid steps, else >= 2 (one per v7x TensorCore)."""
    if HW % 128 != 0:
        # TODO(synk): pad HW or mask the last chunk for non-128-multiple sizes.
        return HW
    per_lane = 2 * 2 * B * C * dtype_bytes            # (x + out) x double-buffer
    p_cap = max(128, min(_MAX_P, (_TILE_VMEM_BUDGET // per_lane) // 128 * 128))
    cands = [p for p in range(128, HW + 1, 128) if HW % p == 0 and p <= p_cap]
    if not cands:
        return HW
    deep = [p for p in cands if HW // p >= _MIN_STEPS]
    if deep:
        return max(deep)                               # big tile AND deep pipeline
    multi = [p for p in cands if HW // p >= 2]
    if multi:
        return max(multi)                              # keep both v7x cores busy
    return max(cands)


def score_model_kernel(inv_std_ref, x_ref, bias1_ref, w1t_ref, w2t_ref, b2_ref,
                       o_ref):
    """One grid step == one lane-dense chunk of P pixels, ALL batch elements.

    inv_std_ref : SMEM (B,)            1 / MarginalProb.stddev(t)   (scalar path)
    x_ref       : VMEM (B, C, P)       P pixels on the lane axis
    bias1_ref   : VMEM (B, hidden, 1)  b1 + swish(t*wt + bt), pre-folded per batch
    w1t_ref     : VMEM (hidden, C)     first layer weight, pre-transposed
    w2t_ref     : VMEM (C, hidden)     second layer weight, pre-transposed
    b2_ref      : VMEM (C, 1)
    o_ref       : VMEM (B, C, P)
    """
    w1t = w1t_ref[...]
    w2t = w2t_ref[...]
    b2 = b2_ref[...]

    B = x_ref.shape[0]
    # Static unroll over the (tiny) batch.
    # TODO(synk): for larger B switch to lax.fori_loop(..., unroll=True) or a
    # Squeezed batch grid axis to bound h/out live ranges (vreg pressure).
    for b in range(B):
        # --- layer 1: [hidden, C] @ [C, P] -> [hidden, P] (pixels stay on lanes)
        h = jnp.dot(w1t, x_ref[b], preferred_element_type=jnp.float32)
        h = h + bias1_ref[b]                  # folded b1 + swish time embedding
        h = h * jax.nn.sigmoid(h)             # swish

        # --- layer 2: [C, hidden] @ [hidden, P] -> [C, P]
        out = jnp.dot(w2t, h, preferred_element_type=jnp.float32)

        # --- ScoreModel.forward: divide by stddev(t) (exact f32, from SMEM)
        o_ref[b] = ((out + b2) * inv_std_ref[b]).astype(o_ref.dtype)


def score_model_forward(x_nchw, t, params):
    """x_nchw: [B, C, H, W], t: [B] -> [B, C, H, W] (same dtype as x)."""
    B, C, H, W = x_nchw.shape
    HW = H * W
    hidden = params["w1"].shape[1]
    out_dtype = x_nchw.dtype

    # NCHW -> [B, C, HW] is a free reshape (no transpose, no extra HBM pass).
    x = x_nchw.reshape(B, C, HW)
    t1 = t.reshape(B).astype(jnp.float32)

    # --- tiny wrapper-side precompute: O(B*hidden), removes per-chunk EUP work
    wt = jnp.asarray(params["wt"], jnp.float32)        # [1, hidden]
    bt = jnp.asarray(params["bt"], jnp.float32)        # [1, hidden]
    b1 = jnp.asarray(params["b1"], jnp.float32)        # [1, hidden]
    emb = t1[:, None] * wt + bt                        # [B, hidden]
    emb = emb * jax.nn.sigmoid(emb)                    # swish time embedding
    bias1 = (b1 + emb)[:, :, None]                     # [B, hidden, 1]

    std = jnp.sqrt((jnp.exp(2.0 * t1 * LOG_SIGMA) - 1.0) / (2.0 * LOG_SIGMA))
    inv_std = (1.0 / std).astype(jnp.float32)          # exact f32 (t -> eps blowup)

    # Pre-transpose the tiny weights once so pixels stay on the lane axis.
    w1t = jnp.asarray(params["w1"], jnp.float32).T     # [hidden, C]
    w2t = jnp.asarray(params["w2"], jnp.float32).T     # [C, hidden]
    b2c = jnp.asarray(params["b2"], jnp.float32).T     # [C, 1]

    # VMEM-derived lane-dense pixel tiling.
    dtype_bytes = jnp.dtype(x.dtype).itemsize
    P = _choose_pixel_tile(HW, B, C, dtype_bytes)
    num_chunks = HW // P

    full2 = lambda i: (0, 0)       # resident weights: same block every step
    full3 = lambda i: (0, 0, 0)

    out = pl.pallas_call(
        score_model_kernel,
        out_shape=jax.ShapeDtypeStruct((B, C, HW), out_dtype),
        grid_spec=pltpu.PrefetchScalarGridSpec(
            num_scalar_prefetch=0,
            grid=(num_chunks,),
            in_specs=[
                pl.BlockSpec(memory_space=pltpu.MemorySpace.SMEM),   # inv_std
                pl.BlockSpec((B, C, P), lambda i: (0, 0, i)),        # x
                pl.BlockSpec((B, hidden, 1), full3),                 # bias1
                pl.BlockSpec((hidden, C), full2),                    # w1^T
                pl.BlockSpec((C, hidden), full2),                    # w2^T
                pl.BlockSpec((C, 1), full2),                         # b2^T
            ],
            out_specs=pl.BlockSpec((B, C, P), lambda i: (0, 0, i)),
        ),
        compiler_params=pltpu.CompilerParams(
            dimension_semantics=("parallel",),
            vmem_limit_bytes=_VMEM_LIMIT_BYTES),
    )(inv_std, x, bias1, w1t, w2t, b2c)

    # [B, C, HW] -> NCHW is again a free reshape.
    return out.reshape(B, C, H, W)


def reference_forward(x_nchw, t, params):
    """Plain-JAX reference of the same forward (for a correctness check)."""
    B, C, H, W = x_nchw.shape
    x = jnp.transpose(x_nchw, (0, 2, 3, 1)).reshape(B, H * W, C)
    emb = t[:, None] * params["wt"] + params["bt"]            # [B, hidden]
    emb = emb * jax.nn.sigmoid(emb)
    h = jnp.einsum("bpc,ch->bph", x, params["w1"]) + params["b1"] + emb[:, None, :]
    h = h * jax.nn.sigmoid(h)
    out = jnp.einsum("bph,hc->bpc", h, params["w2"]) + params["b2"]
    std = jnp.sqrt((jnp.exp(2.0 * t * LOG_SIGMA) - 1.0) / (2.0 * LOG_SIGMA))
    out = out / std[:, None, None]
    return jnp.transpose(out.reshape(B, H, W, C), (0, 3, 1, 2))


if __name__ == "__main__":
    B, C, H, W = 2, 4, 16, 16
    HIDDEN = 32

    key = jax.random.PRNGKey(0)
    kx, kt, k1, k2, k3, k4 = jax.random.split(key, 6)

    x = jax.random.normal(kx, (B, C, H, W), dtype=jnp.float32)
    eps = 1e-5
    t = jax.random.uniform(kt, (B,), dtype=jnp.float32) * (1.0 - eps) + eps

    params = {
        "wt": jax.random.normal(k1, (1, HIDDEN), dtype=jnp.float32) * 0.5,
        "bt": jnp.zeros((1, HIDDEN), dtype=jnp.float32),
        "w1": jax.random.normal(k2, (C, HIDDEN), dtype=jnp.float32) * (1.0 / C ** 0.5),
        "b1": jnp.zeros((1, HIDDEN), dtype=jnp.float32),
        "w2": jax.random.normal(k3, (HIDDEN, C), dtype=jnp.float32) * (1.0 / HIDDEN ** 0.5),
        "b2": jax.random.normal(k4, (1, C), dtype=jnp.float32) * 0.01,
    }

    out = jax.block_until_ready(score_model_forward(x, t, params))
    ref = jax.block_until_ready(reference_forward(x, t, params))

    assert out.shape == (B, C, H, W), out.shape
    assert jnp.allclose(out, ref, atol=1e-4, rtol=1e-4), float(
        jnp.max(jnp.abs(out - ref)))

    print("KERNEL_OK")
</pallas_src>

<mosaic_0001>
module attributes {stable_mosaic.version = 11 : i64} {
  func.func @score_model_kernel(%arg0: i32, %arg1: memref<2xf32, #tpu.memory_space<smem>>, %arg2: memref<2x4x128xf32, #tpu.memory_space<vmem>>, %arg3: memref<2x32x1xf32, #tpu.memory_space<vmem>>, %arg4: memref<32x4xf32, #tpu.memory_space<vmem>>, %arg5: memref<4x32xf32, #tpu.memory_space<vmem>>, %arg6: memref<4x1xf32, #tpu.memory_space<vmem>>, %arg7: memref<2x4x128xf32, #tpu.memory_space<vmem>>) attributes {dimension_semantics = [#tpu.dimension_semantics<parallel>], iteration_bounds = array<i64: 2>, scalar_prefetch = 0 : i64, scratch_operands = 0 : i64, tpu.core_type = #tpu.core_type<tc>, window_params = [{transform_indices = @transform_0, window_bounds = array<i64: 2>}, {transform_indices = @transform_1, window_bounds = array<i64: 2, 4, 128>}, {pipeline_mode = #tpu.pipeline_mode<synchronous>, transform_indices = @transform_2, window_bounds = array<i64: 2, 32, 1>}, {pipeline_mode = #tpu.pipeline_mode<synchronous>, transform_indices = @transform_3, window_bounds = array<i64: 32, 4>}, {pipeline_mode = #tpu.pipeline_mode<synchronous>, transform_indices = @transform_4, window_bounds = array<i64: 4, 32>}, {pipeline_mode = #tpu.pipeline_mode<synchronous>, transform_indices = @transform_5, window_bounds = array<i64: 4, 1>}, {transform_indices = @transform_6, window_bounds = array<i64: 2, 4, 128>}]} {
    %c0 = arith.constant 0 : index
    %c0_0 = arith.constant 0 : index
    %0 = vector.load %arg4[%c0, %c0_0] : memref<32x4xf32, #tpu.memory_space<vmem>>, vector<32x4xf32>
    %c0_1 = arith.constant 0 : index
    %c0_2 = arith.constant 0 : index
    %1 = vector.load %arg5[%c0_1, %c0_2] : memref<4x32xf32, #tpu.memory_space<vmem>>, vector<4x32xf32>
    %c0_3 = arith.constant 0 : index
    %c0_4 = arith.constant 0 : index
    %2 = vector.load %arg6[%c0_3, %c0_4] : memref<4x1xf32, #tpu.memory_space<vmem>>, vector<4x1xf32>
    %c0_5 = arith.constant 0 : index
    %c0_6 = arith.constant 0 : index
    %c0_7 = arith.constant 0 : index
    %3 = vector.load %arg2[%c0_5, %c0_6, %c0_7] : memref<2x4x128xf32, #tpu.memory_space<vmem>>, vector<1x4x128xf32>
    %4 = vector.shape_cast %3 : vector<1x4x128xf32> to vector<4x128xf32>
    %cst = arith.constant dense<0.000000e+00> : vector<32x128xf32>
    %5 = tpu.matmul %0, %4, %cst {dimension_numbers = #tpu.dot_dimension_numbers<[1], [0], [0], [1], [0, 0, 1, 1], [], []>} : vector<32x4xf32>, vector<4x128xf32>, vector<32x128xf32> -> vector<32x128xf32>
    %c0_8 = arith.constant 0 : index
    %c0_9 = arith.constant 0 : index
    %c0_10 = arith.constant 0 : index
    %6 = vector.load %arg3[%c0_8, %c0_9, %c0_10] : memref<2x32x1xf32, #tpu.memory_space<vmem>>, vector<1x32x1xf32>
    %7 = vector.shape_cast %6 : vector<1x32x1xf32> to vector<32x1xf32>
    %8 = vector.broadcast %7 : vector<32x1xf32> to vector<32x128xf32>
    %9 = arith.addf %5, %8 : vector<32x128xf32>
    %10 = arith.negf %9 : vector<32x128xf32>
    %11 = math.exp %10 : vector<32x128xf32>
    %cst_11 = arith.constant 1.000000e+00 : f32
    %12 = vector.broadcast %cst_11 : f32 to vector<32x128xf32>
    %13 = arith.addf %12, %11 : vector<32x128xf32>
    %14 = arith.divf %12, %13 : vector<32x128xf32>
    %15 = arith.mulf %9, %14 : vector<32x128xf32>
    %cst_12 = arith.constant dense<0.000000e+00> : vector<4x128xf32>
    %16 = tpu.matmul %1, %15, %cst_12 {dimension_numbers = #tpu.dot_dimension_numbers<[1], [0], [0], [1], [0, 0, 1, 1], [], []>} : vector<4x32xf32>, vector<32x128xf32>, vector<4x128xf32> -> vector<4x128xf32>
    %17 = vector.broadcast %2 : vector<4x1xf32> to vector<4x128xf32>
    %18 = arith.addf %16, %17 : vector<4x128xf32>
    %c0_13 = arith.constant 0 : index
    %19 = memref.load %arg1[%c0_13] : memref<2xf32, #tpu.memory_space<smem>>
    %20 = vector.broadcast %19 : f32 to vector<4x128xf32>
    %21 = arith.mulf %18, %20 : vector<4x128xf32>
    %c0_14 = arith.constant 0 : index
    %c0_15 = arith.constant 0 : index
    %c0_16 = arith.constant 0 : index
    %22 = vector.load %arg7[%c0_14, %c0_15, %c0_16] : memref<2x4x128xf32, #tpu.memory_space<vmem>>, vector<1x4x128xf32>
    %23 = vector.shape_cast %22 : vector<1x4x128xf32> to vector<4x128xf32>
    %24 = vector.shape_cast %21 : vector<4x128xf32> to vector<1x4x128xf32>
    tpu.vector_store %arg7[%c0_14, %c0_15, %c0_16], %24 {strides = array<i32>} : memref<2x4x128xf32, #tpu.memory_space<vmem>>, vector<1x4x128xf32>,
    %c1 = arith.constant 1 : index
    %c0_17 = arith.constant 0 : index
    %c0_18 = arith.constant 0 : index
    %25 = vector.load %arg2[%c1, %c0_17, %c0_18] : memref<2x4x128xf32, #tpu.memory_space<vmem>>, vector<1x4x128xf32>
    %26 = vector.shape_cast %25 : vector<1x4x128xf32> to vector<4x128xf32>
    %cst_19 = arith.constant dense<0.000000e+00> : vector<32x128xf32>
    %27 = tpu.matmul %0, %26, %cst_19 {dimension_numbers = #tpu.dot_dimension_numbers<[1], [0], [0], [1], [0, 0, 1, 1], [], []>} : vector<32x4xf32>, vector<4x128xf32>, vector<32x128xf32> -> vector<32x128xf32>
    %c1_20 = arith.constant 1 : index
    %c0_21 = arith.constant 0 : index
    %c0_22 = arith.constant 0 : index
    %28 = vector.load %arg3[%c1_20, %c0_21, %c0_22] : memref<2x32x1xf32, #tpu.memory_space<vmem>>, vector<1x32x1xf32>
    %29 = vector.shape_cast %28 : vector<1x32x1xf32> to vector<32x1xf32>
    %30 = vector.broadcast %29 : vector<32x1xf32> to vector<32x128xf32>
    %31 = arith.addf %27, %30 : vector<32x128xf32>
    %32 = arith.negf %31 : vector<32x128xf32>
    %33 = math.exp %32 : vector<32x128xf32>
    %cst_23 = arith.constant 1.000000e+00 : f32
    %34 = vector.broadcast %cst_23 : f32 to vector<32x128xf32>
    %35 = arith.addf %34, %33 : vector<32x128xf32>
    %36 = arith.divf %34, %35 : vector<32x128xf32>
    %37 = arith.mulf %31, %36 : vector<32x128xf32>
    %cst_24 = arith.constant dense<0.000000e+00> : vector<4x128xf32>
    %38 = tpu.matmul %1, %37, %cst_24 {dimension_numbers = #tpu.dot_dimension_numbers<[1], [0], [0], [1], [0, 0, 1, 1], [], []>} : vector<4x32xf32>, vector<32x128xf32>, vector<4x128xf32> -> vector<4x128xf32>
    %39 = vector.broadcast %2 : vector<4x1xf32> to vector<4x128xf32>
    %40 = arith.addf %38, %39 : vector<4x128xf32>
    %c1_25 = arith.constant 1 : index
    %41 = memref.load %arg1[%c1_25] : memref<2xf32, #tpu.memory_space<smem>>
    %42 = vector.broadcast %41 : f32 to vector<4x128xf32>
    %43 = arith.mulf %40, %42 : vector<4x128xf32>
    %c1_26 = arith.constant 1 : index
    %c0_27 = arith.constant 0 : index
    %c0_28 = arith.constant 0 : index
    %44 = vector.load %arg7[%c1_26, %c0_27, %c0_28] : memref<2x4x128xf32, #tpu.memory_space<vmem>>, vector<1x4x128xf32>
    %45 = vector.shape_cast %44 : vector<1x4x128xf32> to vector<4x128xf32>
    %46 = vector.shape_cast %43 : vector<4x128xf32> to vector<1x4x128xf32>
    tpu.vector_store %arg7[%c1_26, %c0_27, %c0_28], %46 {strides = array<i32>} : memref<2x4x128xf32, #tpu.memory_space<vmem>>, vector<1x4x128xf32>,
    return
  }
  func.func @transform_0(%arg0: i32) -> i32 {
    %c0_i32 = arith.constant 0 : i32
    %c0_i32_0 = arith.constant 0 : i32
    return %c0_i32 : i32
  }
  func.func @transform_1(%arg0: i32) -> (i32, i32, i32) {
    %c0_i32 = arith.constant 0 : i32
    %c0_i32_0 = arith.constant 0 : i32
    %c0_i32_1 = arith.constant 0 : i32
    return %c0_i32, %c0_i32_0, %arg0 : i32, i32, i32
  }
  func.func @transform_2(%arg0: i32) -> (i32, i32, i32) {
    %c0_i32 = arith.constant 0 : i32
    %c0_i32_0 = arith.constant 0 : i32
    %c0_i32_1 = arith.constant 0 : i32
    %c0_i32_2 = arith.constant 0 : i32
    return %c0_i32, %c0_i32_0, %c0_i32_1 : i32, i32, i32
  }
  func.func @transform_3(%arg0: i32) -> (i32, i32) {
    %c0_i32 = arith.constant 0 : i32
    %c0_i32_0 = arith.constant 0 : i32
    %c0_i32_1 = arith.constant 0 : i32
    return %c0_i32, %c0_i32_0 : i32, i32
  }
  func.func @transform_4(%arg0: i32) -> (i32, i32) {
    %c0_i32 = arith.constant 0 : i32
    %c0_i32_0 = arith.constant 0 : i32
    %c0_i32_1 = arith.constant 0 : i32
    return %c0_i32, %c0_i32_0 : i32, i32
  }
  func.func @transform_5(%arg0: i32) -> (i32, i32) {
    %c0_i32 = arith.constant 0 : i32
    %c0_i32_0 = arith.constant 0 : i32
    %c0_i32_1 = arith.constant 0 : i32
    return %c0_i32, %c0_i32_0 : i32, i32
  }
  func.func @transform_6(%arg0: i32) -> (i32, i32, i32) {
    %c0_i32 = arith.constant 0 : i32
    %c0_i32_0 = arith.constant 0 : i32
    %c0_i32_1 = arith.constant 0 : i32
    return %c0_i32, %c0_i32_0, %arg0 : i32, i32, i32
  }
}

</mosaic_0001>

<bundles_post_ra>
// kernel: tpu_custom_call.1
= control target key start
LH: loop header
LB: loop body
LE: loop exit
PB: predicated region body
PF: predicated region fallthrough
CT: control target
= control target key end

     0   :  { %11 = vsyncpa [#allocation4], 0  ;;  %s1398_s0 = inlined_call_operand.vmem [shape: f32[2], index: 0, kind: input, shape index: {}]   ;;  %s1399_s1 = inlined_call_operand.vmem [shape: f32[2,4,256], index: 1, kind: input, shape index: {}]   ;;  %s1400_s2 = inlined_call_operand.vmem [shape: f32[2,32,1], index: 2, kind: input, shape index: {}]   ;;  %s1401_s3 = inlined_call_operand.vmem [shape: f32[32,4], index: 3, kind: input, shape index: {}]   ;;  %s1402_s4 = inlined_call_operand.vmem [shape: f32[4,32], index: 4, kind: input, shape index: {}]   ;;  %s1403_s5 = inlined_call_operand.vmem [shape: f32[4,1], index: 5, kind: input, shape index: {}]   ;;  %s1404_s6 = inlined_call_operand.hbm [shape: f32[2,4,256], index: 6, kind: output, shape index: {}]  }
   0x1   :  { %12 = vsyncpa [#allocation3], 0 }
   0x2   :  { %14 = vsyncpa [#allocation3 + $0x1], 0  ;;  %s1179_s21 = smov 0   ;;  %s1181_s22 = smov 0  }
   0x3   :  { %s1183_s23 = smov 0   ;;  %s1185_s24 = smov 0  }
   0x4 LB: > { %s1200_s25 = sadd.s32 4294967295, %s1134_s24   ;;  %s866_s26 = sadd.s32 4294967294, %s1134_s24   ;;  %s1134_s24 = sphi %s1185_s24, %s1415_s24   ;;  %s1130_s23 = sphi %s1183_s23, %s1414_s23   ;;  %s1126_s22 = sphi %s1181_s22, %s1413_s22   ;;  %s1122_s21 = sphi %s1179_s21, %s1412_s21  }
   0x5   : > { %s1204_s27 = sadd.s32 1, %s1134_s24   ;;  %s48_s28 = sadd.s32 1, %s1130_s23 }
   0x6   : > { %s45_s29 = ssub.s32 %s1134_s24, %s1204_s27  ;;  %p55_p0 = scmp.ne.s32.totalorder %s1130_s23, %s1126_s22 }
   0x7   : > { %p46_p1 = scmp.eq.s32.totalorder %s45_s29, 0  ;;  %p56_p2 = scmp.eq.s32.totalorder %s1134_s24, 0 }
   0x8   : > { %p169_p3 = scmp.eq.s32.totalorder %s1200_s25, 1  ;;  %p174_p4 = scmp.ne.s32.totalorder %s1126_s22, %s1122_s21 }
   0x9   : > { %s1216_s30 = scalar_select %p46_p1, %s1130_s23, %s48_s28  }
   0xa   : > { %p1218_p5 = por %p56_p2, %p55_p0  ;;  %p1222_p6 = por %p169_p3, %p55_p0 }
   0xb   : > { %p175_p7 = scmp.eq.s32.totalorder %s866_s26, 1  ;;  %p867_p8 = scmp.ge.s32.totalorder %s1134_s24, 1 }
   0xc   : > { %s1407_s8 = scalar_select %p1222_p6, 1, 0 }
   0xd   : > { %p182_p9 = scmp.lt.s32.totalorder %s1134_s24, 3  ;;  %p1228_p10 = por %p175_p7, %p174_p4 }
   0xe   : > { %p979_p11 = scmp.eq.s32.totalorder %s1200_s25, 0  ;;  %s195_s13 = sshll.u32 %s1398_s0, 4  ;;  %s196_s13 = int_to_ptr.vmem [resolvable:$true] %s195_s13 }
   0xf   : > { %s1408_s9 = scalar_select %p1228_p10, 1, 0 }
  0x10   : > { %p1233_p12 = pnand %p867_p8, %p182_p9  ;;  %s1055_s14 = scalar_lea.vmem %s196_s13, 16 }
  0x11   : > { %p1056_p1 = scmp.ne.s32.totalorder %s196_s13, %s1055_s14  ;;  %p1063_p7 = scmp.lt.s32.totalorder %s196_s13, %s196_s13 }
  0x12   : > { %p971_p13 = pneg %p1233_p12  ;;  %p1064_p8 = scmp.lt.s32.totalorder %s1055_s14, %s1055_s14 }
  0x14   : > { %p972_p0 = pnand %p979_p11, %p971_p13  ;;  %p1065_p9 = por %p1064_p8, %p1063_p7 }
  0x16   : > { %p1057_p2 = pneg %p972_p0 }
  0x18   : > { %p1058_p3 = pnand %p1057_p2, %p1056_p1 }
  0x1a   : > { %p1059_p4 = pneg %p1058_p3 }
  0x1c   : > { %p1066_p10 = pnand %p1065_p9, %p1059_p4 }
  0x1e   : > { %1069 = shalt.err (!%p1066_p10)
}
  0x1f   : > { %s1136_s15 = smov [#allocation2]   ;;  %p869_p6 = scmp.ge.s32.totalorder %s1134_s24, 2 }
  0x20   : > { %974 = dma.vmem_to_smem (!%p972_p0), %s196_s13, 16, %s1136_s15, [#allocation4]  }
  0x21   : > { %214 = sbr.rel (%p869_p6) target bundleno = 43 (0x2b), region = 36 }
  0x26   : > { %217 = sbr.rel (!%p1218_p5) target bundleno = 43 (0x2b), region = 40  ;;  %s219_s16 = sand.u32 (%p1218_p5), 1, %s1130_s23  }
  0x27   : > { %s871_s17 = sshll.u32 (%p1218_p5), %s1134_s24, 2  ;;  %s870_s18 = sshll.u32 (%p1218_p5), %s219_s16, 3 }
  0x28   : > { %s223_s26 = scalar_lea.vmem (%p1218_p5), %s1399_s1, %s871_s17  ;;  %s221_s28 = scalar_lea.vmem (%p1218_p5), [#allocation5], %s870_s18 }
  0x29   : > { %v240_v0 = vld [vmem:[%s223_s26] sm:$0xf] (%p1218_p5)  ;;  %v242_v1 = vld [vmem:[%s223_s26 + $0x8] sm:$0xf] (%p1218_p5) }
  0x2a   : > { %241 = vst [vmem:[%s221_s28] sm:$0xf] (%p1218_p5), %v240_v0  ;;  %243 = vst [vmem:[%s221_s28 + $0x4] sm:$0xf] (%p1218_p5), %v242_v1 }
  0x2b PF: > { %274 = sbr.rel (%p1233_p12) target bundleno = 516 (0x204), region = 81 }
  0x30   : > { %1113 = dma.done.wait (%p979_p11), [#allocation4], 16  }
  0x31   : > { %1115 = vsyncadd (%p979_p11), [#allocation4], 4294967280  ;;  %s281_s29 = sand.u32 1, %s1126_s22  }
  0x32   : > { %s1263_s7 = sshll.u32 %s281_s29, 3 }
  0x33   : > { %s283_s11 = scalar_lea.vmem [#allocation5], %s1263_s7 }
  0x34   : > { %287 = sfence }
  0x35   : > { %v317_v2 = vld [vmem:[%s283_s11] sm:$0xf]  ;;  %vm355_vm0 = vcmask 1043456   ;;  %vm342_vm1 = vcmask 31744   ;;  %v886_v5 = vld [vmem:[%s283_s11 + $0x4] sm:$0xf] }
  0x36   : > { %v311_v3 = vld [vmem:[%s1401_s3] sm:$0xff]  ;;  %v312_v4 = vld [vmem:[%s1401_s3 + $0x8] sm:$0xff]  ;;  %927 = vmatprep.subr.msk.mxu0 %vm355_vm0, %v317_v2  ;;  %v313_v6 = vld [vmem:[%s1401_s3 + $0x10] sm:$0xff]  ;;  %v1137_v7 = vmov 0   ;;  %v1138_v18 = vmov 0.0   ;;  %vm1139_vm2 = vmmov 0  }
  0x37   : > { %929 = vmatprep.mubr.msk.f32.mxu0 %vm342_vm1, %v311_v3  ;;  %928 = vmatpush3.msk.msra.mxu0 %vm355_vm0, %v317_v2  ;;  %v321_v8 = vld [vmem:[%s1400_s2 + $0x18] sm:$0xff]  ;;  %v319_v9 = vld [vmem:[%s1400_s2 + $0x8] sm:$0xff]  ;;  %v320_v11 = vld [vmem:[%s1400_s2 + $0x10] sm:$0xff]  ;;  %vm477_vm3 = vcmask 261120   ;;  %s551_s13 = sld [smem:[#allocation2]]  ;;  %s310_s15 = scalar_lea.vmem [#allocation6], %s1263_s7 }
  0x38   : > { %1021 = vset.pattern.permute.xlu0 %v1137_v7  ;;  %930 = vmatmul.mubr.msk.f32.vlgmr.msra.gmra.mxu0 %vm342_vm1, %v312_v4  ;;  %v314_v10 = vld [vmem:[%s1401_s3 + $0x18] sm:$0xff]  ;;  %v318_v12 = vld [vmem:[%s1400_s2] sm:$0xff]  ;;  %v889_v14 = vld [vmem:[%s1400_s2 + $0x30] sm:$0xff]  ;;  %s901_s14 = sld [smem:[#allocation2 + $0x1]]  ;;  %s786_s16 = sshll.u32 %s310_s15, 4  ;;  %s1348_s16 = int_to_ptr.vmem [resolvable:$true] %s786_s16 }
  0x39   : > { %946 = vmatprep.subr.msk.mxu0 %vm355_vm0, %v886_v5  ;;  %932 = vmatprep.mubr.msk.f32.mxu0 %vm342_vm1, %v313_v6  ;;  %v890_v13 = vld [vmem:[%s1400_s2 + $0x38] sm:$0xff]  ;;  %v888_v15 = vld [vmem:[%s1400_s2 + $0x28] sm:$0xff]  ;;  %v887_v16 = vld [vmem:[%s1400_s2 + $0x20] sm:$0xff]  ;;  %s904_s17 = sshll.u32 %s1200_s25, 6  ;;  %s1357_s7 = scalar_lea.sflag [#allocation3], %s281_s29 }
  0x3a   : > { %947 = vmatpush3.msk.msra.mxu0 %vm355_vm0, %v886_v5  ;;  %339 = vperm.xlu0 %1021, %v321_v8   ;;  %v316_v17 = vld [vmem:[%s1403_s5] sm:$0xf]  ;;  %s1353_s20 = scalar_lea.hbm %s1404_s6, %s904_s17  ;;  %s1070_s25 = scalar_lea.vmem %s1348_s16, 128 }
  0x3b   : > { %1022 = vset.pattern.permute.xlu1 %v1137_v7  ;;  %935 = vmatprep.subr.mxu1 %v1138_v18  ;;  %p1071_p5 = scmp.ne.s32.totalorder %s1348_s16, %s1070_s25  ;;  %p1410_p10 = scmp.ne.s32.totalorder %s1407_s8, 0 }
  0x3c   : > { %329 = vperm.xlu1 %1022, %v319_v9   ;;  %933 = vmatmul.mubr.msk.f32.gmra.mxu0 %vm342_vm1, %v314_v10  ;;  %s1140_s26 = smov [#allocation6]  }
  0x3d   : > { %948 = vmatprep.mubr.msk.f32.mxu0 %vm342_vm1, %v311_v3  ;;  %943 = vmatprep.mubr.msk.f32.mxu1 %vm1139_vm2, %v1138_v18  ;;  %p1072_p11 = pnand %p1071_p5, %p1410_p10  ;;  %s1074_s28 = sshll.u32 %s1140_s26, 4  ;;  %s1075_s28 = int_to_ptr.vmem [resolvable:$false] %s1074_s28 }
  0x3e   : > { %334 = vperm.xlu0 %1021, %v320_v11   ;;  %v315_v11 = vld [vmem:[%s1402_s4] sm:$0xf]  ;;  %s1076_s11 = scalar_lea.vmem %s1075_s28, 256  ;;  %p1077_p13 = scmp.lt.s32.totalorder %s1348_s16, %s1075_s28 }
  0x3f   : > { %p1073_p12 = pneg %p1072_p11  ;;  %p1078_p0 = scmp.lt.s32.totalorder %s1076_s11, %s1070_s25 }
  0x40   : > { %324 = vperm.xlu1 %1022, %v318_v12   ;;  %949 = vmatmul.mubr.msk.f32.vlgmr.msra.gmra.mxu0 %vm342_vm1, %v312_v4 }
  0x41   : > { %951 = vmatprep.mubr.msk.f32.mxu0 %vm342_vm1, %v313_v6  ;;  %p1079_p1 = por %p1078_p0, %p1077_p13 }
  0x42   : > { %579 = vperm.xlu0 %1021, %v890_v13  }
  0x43   : > { %p1080_p2 = pnand %p1079_p1, %p1073_p12 }
  0x44   : > { %574 = vperm.xlu1 %1022, %v889_v14   ;;  %952 = vmatmul.mubr.msk.f32.gmra.mxu0 %vm342_vm1, %v314_v10 }
  0x46   : > { %569 = vperm.xlu0 %1021, %v888_v15  }
  0x48   : > { %564 = vperm.xlu1 %1022, %v887_v16  }
  0x4a   : > { %474 = vperm.xlu0 %1021, %v316_v17  }
  0xb5   : > { %v340_v19 = vpop.permute.xlu0 %339 }
  0xb7   : > { %v330_v20 = vpop.permute.xlu1 %329 }
  0xb9   : > { %v335_v21 = vpop.permute.xlu0 %334 }
  0xbb   : > { %v325_v22 = vpop.permute.xlu1 %324 }
  0xbd   : > { %v580_v25 = vpop.permute.xlu0 %579 }
  0xbf   : > { %v575_v29 = vpop.permute.xlu1 %574 }
  0xc1   : > { %v570_v36 = vpop.permute.xlu0 %569 }
  0xc3   : > { %v565_v40 = vpop.permute.xlu1 %564 }
  0xf8   : > { %v931_v23 = vpop.f32.mrf.mxu0 }
  0xf9   : > { %v1316_v24 = vadd.f32 %v931_v23, %v330_v20  ;;  %v552_v23 = vstv %s551_s13 }
  0xfa   : > { %v425_v26 = vpop.f32.mrf.mxu0 }
  0xfb   : > { %v882_v27 = vmul.f32 -1.442695, %v1316_v24  ;;  %v1319_v28 = vadd.f32 %v425_v26, %v325_v22 }
  0xfc   : > { %v934_v30 = vpop.f32.mrf.mxu0 }
  0xfd   : > { %v881_v31 = vmul.f32 -1.442695, %v1319_v28  ;;  %v441_v32 = vadd.f32 %v934_v30, %v340_v19  ;;  %1023 = vpow2.f32 %v882_v27 }
  0xfe   : > { %v435_v33 = vpop.f32.mrf.mxu0 }
  0xff   : > { %v884_v34 = vmul.f32 -1.442695, %v441_v32  ;;  %v436_v35 = vadd.f32 %v435_v33, %v335_v21  ;;  %1025 = vpow2.f32 %v881_v31  ;;  %v475_v21 = vpop.permute.xlu0 %474 }
 0x100   : > { %v950_v37 = vpop.f32.mrf.mxu0 }
 0x101   : > { %1027 = vpow2.f32 %v884_v34  ;;  %v883_v38 = vmul.f32 -1.442695, %v436_v35  ;;  %v1322_v39 = vadd.f32 %v950_v37, %v570_v36 }
 0x102   : > { %v651_v41 = vpop.f32.mrf.mxu0 }
 0x103   : > { %1029 = vpow2.f32 %v883_v38  ;;  %v897_v42 = vmul.f32 -1.442695, %v1322_v39  ;;  %v1325_v43 = vadd.f32 %v651_v41, %v565_v40 }
 0x104   : > { %v953_v44 = vpop.f32.mrf.mxu0 }
 0x105   : > { %v896_v45 = vmul.f32 -1.442695, %v1325_v43  ;;  %v667_v46 = vadd.f32 %v953_v44, %v580_v25  ;;  %1031 = vpow2.f32 %v897_v42 }
 0x106   : > { %v661_v47 = vpop.f32.mrf.mxu0 }
 0x107   : > { %v899_v48 = vmul.f32 -1.442695, %v667_v46  ;;  %v662_v49 = vadd.f32 %v661_v47, %v575_v29  ;;  %1033 = vpow2.f32 %v896_v45 }
 0x109   : > { %1035 = vpow2.f32 %v899_v48  ;;  %v898_v50 = vmul.f32 -1.442695, %v662_v49 }
 0x10a   : > { %v1024_v51 = vpop.eup %1023 }
 0x10b   : > { %1037 = vpow2.f32 %v898_v50  ;;  %v457_v54 = vadd.f32 1.0, %v1024_v51 }
 0x10c   : > { %v1026_v52 = vpop.eup %1025 }
 0x10d   : > { %v456_v57 = vadd.f32 1.0, %v1026_v52 }
 0x10e   : > { %v1028_v53 = vpop.eup %1027 }
 0x10f   : > { %v459_v55 = vadd.f32 1.0, %v1028_v53 }
 0x110   : > { %v1030_v56 = vpop.eup %1029 }
 0x111   : > { %1039 = vrcp.f32 %v459_v55  ;;  %v458_v58 = vadd.f32 1.0, %v1030_v56 }
 0x112   : > { %1041 = vrcp.f32 %v457_v54  ;;  %v1032_v59 = vpop.eup %1031 }
 0x113   : > { %1043 = vrcp.f32 %v458_v58  ;;  %v683_v62 = vadd.f32 1.0, %v1032_v59 }
 0x114   : > { %v1034_v60 = vpop.eup %1033  ;;  %1045 = vrcp.f32 %v456_v57 }
 0x115   : > { %v682_v1 = vadd.f32 1.0, %v1034_v60 }
 0x116   : > { %v1036_v61 = vpop.eup %1035 }
 0x117   : > { %v685_v63 = vadd.f32 1.0, %v1036_v61 }
 0x118   : > { %v1038_v0 = vpop.eup %1037 }
 0x119   : > { %1047 = vrcp.f32 %v685_v63  ;;  %v684_v2 = vadd.f32 1.0, %v1038_v0 }
 0x11a   : > { %1049 = vrcp.f32 %v683_v62 }
 0x11b   : > { %1051 = vrcp.f32 %v684_v2 }
 0x11c   : > { %1053 = vrcp.f32 %v682_v1 }
 0x11e   : > { %v1040_v3 = vpop.eup %1039 }
 0x11f   : > { %v1042_v4 = vpop.eup %1041  ;;  %v471_v5 = vmul.f32 %v1040_v3, %v441_v32 }
 0x120   : > { %v1044_v6 = vpop.eup %1043  ;;  %v469_v9 = vmul.f32 %v1042_v4, %v1316_v24 }
 0x121   : > { %v470_v7 = vmul.f32 %v1044_v6, %v436_v35  ;;  %936 = vmatpush3.msra.mxu1 %v471_v5  ;;  %v1046_v8 = vpop.eup %1045 }
 0x122   : > { %937 = vmatprep.subr.mxu1 %v1138_v18  ;;  %v468_v10 = vmul.f32 %v1046_v8, %v1319_v28  ;;  %v769_v28 = vstv %s901_s14 }
 0x123   : > { %938 = vmatpush3.msra.mxu1 %v470_v7 }
 0x124   : > { %939 = vmatprep.subr.mxu1 %v1138_v18 }
 0x125   : > { %940 = vmatpush3.msra.mxu1 %v469_v9 }
 0x126   : > { %v1048_v12 = vpop.eup %1047  ;;  %941 = vmatprep.subr.mxu1 %v1138_v18 }
 0x127   : > { %v1050_v13 = vpop.eup %1049  ;;  %v697_v14 = vmul.f32 %v1048_v12, %v667_v46  ;;  %942 = vmatpush3.msra.mxu1 %v468_v10 }
 0x128   : > { %v1052_v15 = vpop.eup %1051  ;;  %944 = vmatmul.mubr.msk.f32.vlgmr.msra.gmra.mxu1 %vm477_vm3, %v315_v11  ;;  %954 = vmatprep.subr.mxu1 %v1138_v18  ;;  %v695_v19 = vmul.f32 %v1050_v13, %v1322_v39 }
 0x129   : > { %v696_v16 = vmul.f32 %v1052_v15, %v662_v49  ;;  %955 = vmatpush3.msra.mxu1 %v697_v14  ;;  %962 = vmatprep.mubr.msk.f32.mxu1 %vm1139_vm2, %v1138_v18  ;;  %v1054_v17 = vpop.eup %1053 }
 0x12a   : > { %956 = vmatprep.subr.mxu1 %v1138_v18  ;;  %v694_v20 = vmul.f32 %v1054_v17, %v1325_v43 }
 0x12b   : > { %957 = vmatpush3.msra.mxu1 %v696_v16 }
 0x12c   : > { %958 = vmatprep.subr.mxu1 %v1138_v18 }
 0x12d   : > { %959 = vmatpush3.msra.mxu1 %v695_v19 }
 0x12e   : > { %960 = vmatprep.subr.mxu1 %v1138_v18 }
 0x12f   : > { %961 = vmatpush3.msra.mxu1 %v694_v20 }
 0x130   : > { %963 = vmatmul.mubr.msk.f32.vlgmr.msra.gmra.mxu1 %vm477_vm3, %v315_v11 }
 0x1e8   : > { %v547_v22 = vpop.f32.mrf.mxu1 }
 0x1e9   : > { %v548_v24 = vadd.f32 %v547_v22, %v475_v21 }
 0x1ea   : > { %v945_v25 = vpop.f32.mrf.mxu1 }
 0x1eb   : > { %v553_v26 = vmul.f32 %v552_v23, %v548_v24 }
 0x1ed   : > { %554 = vst [vmem:[%s310_s15] sm:$0xf] %v553_v26 }
 0x1f0   : > { %v764_v27 = vpop.f32.mrf.mxu1 }
 0x1f1   : > { %v765_v18 = vadd.f32 %v764_v27, %v475_v21 }
 0x1f2   : > { %v964_v29 = vpop.f32.mrf.mxu1 }
 0x1f3   : > { %v770_v30 = vmul.f32 %v769_v28, %v765_v18 }
 0x1f5   : > { %902 = vst [vmem:[%s310_s15 + $0x4] sm:$0xf] %v770_v30 }
 0x1f6   : > { %1083 = shalt.err (!%p1080_p2)
}
 0x1f7   : > { %s1084_s29 = scalar_lea.hbm %s1353_s20, 128  ;;  %s1088_s13 = scalar_lea.hbm %s1404_s6, 256 }
 0x1f8   : > { %p1085_p3 = scmp.ne.s32.totalorder %s1353_s20, %s1084_s29  ;;  %p1089_p8 = scmp.lt.s32.totalorder %s1353_s20, %s1404_s6 }
 0x1f9   : > { %p1090_p9 = scmp.lt.s32.totalorder %s1088_s13, %s1084_s29 }
 0x1fa   : > { %p1086_p4 = pnand %p1085_p3, %p1410_p10 }
 0x1fb   : > { %p1091_p5 = por %p1090_p9, %p1089_p8 }
 0x1fc   : > { %p1087_p7 = pneg %p1086_p4 }
 0x1fe   : > { %p1092_p11 = pnand %p1091_p5, %p1087_p7 }
 0x200   : > { %1095 = shalt.err (!%p1092_p11)
}
 0x201   : > { %s1141_s17 = smov 64   ;;  %s1142_s18 = smov 128  }
 0x202   : > { %s1143_s19 = smov 4  }
 0x203   : > { %969 = dma.vmem_to_hbm [thread:$0]  (%p1410_p10), %s1348_s16, 128, %s1353_s20, %s1357_s7, %s1141_s17, %s1142_s18, %s1143_s19  }
 0x204 PF: > { %s801_s25 = sand.u32 1, %s1122_s21   ;;  %p1411_p12 = scmp.ne.s32.totalorder %s1408_s9, 0 }
 0x205   : > { %s802_s26 = scalar_lea.sflag [#allocation3], %s801_s25 }
 0x206   : > { %p976_p13 = pnand %p869_p6, %p1411_p12 }
 0x208   : > { %p977_p0 = pneg %p976_p13 }
 0x20a   : > { %1117 = dma.done.wait (%p977_p0), %s802_s26, 128  }
 0x20b   : > { %1119 = vsyncadd (%p977_p0), %s802_s26, 4294967168  ;;  %p17_p1 = scmp.ge.s32.totalorder %s1204_s27, 4   ;;  %s1412_s21 = smov %s1126_s22 }
 0x20c   : > { %s1413_s22 = smov %s1130_s23  ;;  %s1414_s23 = smov %s1216_s30 }
 0x20d   : > { %s1415_s24 = smov %s1204_s27  ;;  %19 = sbr.rel (!%p17_p1) target bundleno = 4 (0x4), region = 133 }
 0x212   :  { %807 = vsyncpa [#allocation3], 1 }
 0x213   :  { %809 = vsyncpa [#allocation3 + $0x1], 1 }
 0x214   :  { %810 = vsyncpa [#allocation4], 1 }
 0x215   :  { %812 = vsyncpa [#allocation4 + $0x1], 1 }

</bundles_post_ra>
